<compile_context>
chip_gen: v7x
topology: tpu7x:2x2x1
jax: 0.10.0
libtpu: 0.0.40
codegen_flags: <defaults>
</compile_context>

<pallas_src>
import math

import jax
import jax.numpy as jnp
from jax.experimental import pallas as pl
from jax.experimental.pallas import tpu as pltpu


# ----------------------------- config ---------------------------------------
INPUT_DIM = 512
LAYER_DIMS = (256, 128)
LATENT_DIM = 6
INPUT_CHANNELS = 1
BATCH = 8

HEAD_PAD = 128  # lane-dense width for the fused (mu || log_var) head output


def _round_up(n, m):
    return ((n + m - 1) // m) * m


def _gelu_exact(x):
    # torch.nn.GELU() default is the exact (erf-based) GELU.
    inv_sqrt2 = jnp.float32(1.0 / math.sqrt(2.0))
    return jnp.float32(0.5) * x * (jnp.float32(1.0) + jax.lax.erf(x * inv_sqrt2))


# ----------------------------- kernel ----------------------------------------
def encoder_kernel(x_ref, w1_ref, b1_ref, w2_ref, b2_ref, wh_ref, bh_ref, out_ref):
    # Activations enter f32, are cast to bf16 for the MXU; accumulation is f32.
    x = x_ref[...].astype(jnp.bfloat16)                                   # (TB, 512)

    # Linear(512 -> 256) + GELU
    h = jnp.dot(x, w1_ref[...], preferred_element_type=jnp.float32) + b1_ref[...]
    h = _gelu_exact(h)                                                    # (TB, 256) f32

    # Linear(256 -> 128) + GELU
    h = jnp.dot(h.astype(jnp.bfloat16), w2_ref[...],
                preferred_element_type=jnp.float32) + b2_ref[...]
    h = _gelu_exact(h)                                                    # (TB, 128) f32

    # Fused latent heads: Linear(128 -> 128-padded [mu | log_var | zeros])
    out = jnp.dot(h.astype(jnp.bfloat16), wh_ref[...],
                  preferred_element_type=jnp.float32) + bh_ref[...]
    out_ref[...] = out.astype(out_ref.dtype)                              # (TB, 128)


# ----------------------------- wrapper ----------------------------------------
@jax.jit
def encoder_forward(x, packed):
    """x: (B, C, input_dim) or (B, input_dim). packed = pack_params(raw).
    Returns [mu, log_var] each (B, latent_dim) float32."""
    w1, b1, w2, b2, wh, bh = packed
    B = x.shape[0]
    x2d = x.reshape(B, -1).astype(jnp.float32)                 # x.view(x.size(0), -1)
    D = x2d.shape[1]
    H1, H2, P = w1.shape[1], w2.shape[1], wh.shape[1]
    L = LATENT_DIM

    # Batch tiling: TB rows per grid step (multiple of 8); pad B if needed.
    if B >= 256:
        TB = 256                       # multiple tiles, pipelined / megacore-sharded
    else:
        TB = max(8, _round_up(B, 8))   # single tile, minimal sublane padding
    nb = pl.cdiv(B, TB)
    Bp = nb * TB
    if Bp != B:
        x2d = jnp.pad(x2d, ((0, Bp - B), (0, 0)))

    out = pl.pallas_call(
        encoder_kernel,
        out_shape=jax.ShapeDtypeStruct((Bp, P), jnp.float32),
        grid=(nb,),
        in_specs=[
            pl.BlockSpec((TB, D), lambda i: (i, 0)),           # activations: pipelined
            pl.BlockSpec((D, H1), lambda i: (0, 0)),           # weights: VMEM-resident
            pl.BlockSpec((1, H1), lambda i: (0, 0)),
            pl.BlockSpec((H1, H2), lambda i: (0, 0)),
            pl.BlockSpec((1, H2), lambda i: (0, 0)),
            pl.BlockSpec((H2, P), lambda i: (0, 0)),
            pl.BlockSpec((1, P), lambda i: (0, 0)),
        ],
        out_specs=pl.BlockSpec((TB, P), lambda i: (i, 0)),     # lane-dense output slab
        compiler_params=pltpu.CompilerParams(
            dimension_semantics=("parallel",)),
    )(x2d, w1, b1, w2, b2, wh, bh)

    mu = out[:B, :L]
    log_var = out[:B, L:2 * L]
    return [mu, log_var]


# ----------------------------- param packing ----------------------------------
def init_raw_params(key):
    """Torch-Linear-like uniform fan-in init. Weights stored (in_dim, out_dim)
    (transpose of torch layout), f32."""
    dims = [(INPUT_DIM, LAYER_DIMS[0]), (LAYER_DIMS[0], LAYER_DIMS[1])]
    heads = [(LAYER_DIMS[-1], LATENT_DIM), (LAYER_DIMS[-1], LATENT_DIM)]
    params = []
    for (din, dout) in dims + heads:
        key, kw, kb = jax.random.split(key, 3)
        bound = 1.0 / math.sqrt(din)
        w = jax.random.uniform(kw, (din, dout), jnp.float32, -bound, bound)
        b = jax.random.uniform(kb, (1, dout), jnp.float32, -bound, bound)
        params += [w, b]
    return tuple(params)


def pack_params(raw):
    """One-time preprocessing: cast weights to bf16, fuse mu/log_var heads into
    a single lane-dense (H2, 128) slab (zero-padded beyond 2*L)."""
    w1, b1, w2, b2, wmu, bmu, wlv, blv = raw
    H2, L = wmu.shape
    wh = jnp.zeros((H2, HEAD_PAD), jnp.float32)
    wh = wh.at[:, :L].set(wmu).at[:, L:2 * L].set(wlv)
    bh = jnp.zeros((1, HEAD_PAD), jnp.float32)
    bh = bh.at[:, :L].set(bmu).at[:, L:2 * L].set(blv)
    return (w1.astype(jnp.bfloat16), b1.astype(jnp.float32),
            w2.astype(jnp.bfloat16), b2.astype(jnp.float32),
            wh.astype(jnp.bfloat16), bh.astype(jnp.float32))


# ----------------------------- reference --------------------------------------
def encoder_reference(x, packed):
    """Pure-JAX reference mirroring the kernel's dtype path (bf16 matmul inputs,
    f32 accumulation / GELU)."""
    w1, b1, w2, b2, wh, bh = packed
    x2d = x.reshape(x.shape[0], -1).astype(jnp.float32)
    h = _gelu_exact(jnp.dot(x2d.astype(jnp.bfloat16), w1,
                            preferred_element_type=jnp.float32) + b1)
    h = _gelu_exact(jnp.dot(h.astype(jnp.bfloat16), w2,
                            preferred_element_type=jnp.float32) + b2)
    out = jnp.dot(h.astype(jnp.bfloat16), wh,
                  preferred_element_type=jnp.float32) + bh
    L = LATENT_DIM
    return [out[:, :L], out[:, L:2 * L]]


# ----------------------------- main --------------------------------------------
if __name__ == "__main__":
    key = jax.random.PRNGKey(0)
    kx, kp = jax.random.split(key)

    # Small input consistent with the module (flattened size == input_dim).
    x = jax.random.normal(kx, (BATCH, INPUT_CHANNELS, INPUT_DIM), jnp.float32)
    raw = init_raw_params(kp)
    packed = pack_params(raw)

    mu, log_var = encoder_forward(x, packed)
    jax.block_until_ready(mu)
    jax.block_until_ready(log_var)

    mu_ref, lv_ref = encoder_reference(x, packed)
    assert mu.shape == (BATCH, LATENT_DIM) and log_var.shape == (BATCH, LATENT_DIM)
    assert jnp.allclose(mu, mu_ref, atol=2e-3, rtol=2e-3)
    assert jnp.allclose(log_var, lv_ref, atol=2e-3, rtol=2e-3)

    print("KERNEL_OK")
</pallas_src>

<mosaic_0001>
module attributes {stable_mosaic.version = 11 : i64} {
  func.func @encoder_kernel(%arg0: i32, %arg1: memref<8x512xf32, #tpu.memory_space<vmem>>, %arg2: memref<512x256xbf16, #tpu.memory_space<vmem>>, %arg3: memref<1x256xf32, #tpu.memory_space<vmem>>, %arg4: memref<256x128xbf16, #tpu.memory_space<vmem>>, %arg5: memref<1x128xf32, #tpu.memory_space<vmem>>, %arg6: memref<128x128xbf16, #tpu.memory_space<vmem>>, %arg7: memref<1x128xf32, #tpu.memory_space<vmem>>, %arg8: memref<8x128xf32, #tpu.memory_space<vmem>>) attributes {dimension_semantics = [#tpu.dimension_semantics<parallel>], iteration_bounds = array<i64: 1>, scalar_prefetch = 0 : i64, scratch_operands = 0 : i64, tpu.core_type = #tpu.core_type<tc>, window_params = [{transform_indices = @transform_0, window_bounds = array<i64: 8, 512>}, {pipeline_mode = #tpu.pipeline_mode<synchronous>, transform_indices = @transform_1, window_bounds = array<i64: 512, 256>}, {pipeline_mode = #tpu.pipeline_mode<synchronous>, transform_indices = @transform_2, window_bounds = array<i64: 1, 256>}, {pipeline_mode = #tpu.pipeline_mode<synchronous>, transform_indices = @transform_3, window_bounds = array<i64: 256, 128>}, {pipeline_mode = #tpu.pipeline_mode<synchronous>, transform_indices = @transform_4, window_bounds = array<i64: 1, 128>}, {pipeline_mode = #tpu.pipeline_mode<synchronous>, transform_indices = @transform_5, window_bounds = array<i64: 128, 128>}, {pipeline_mode = #tpu.pipeline_mode<synchronous>, transform_indices = @transform_6, window_bounds = array<i64: 1, 128>}, {transform_indices = @transform_7, window_bounds = array<i64: 8, 128>}]} {
    %c0 = arith.constant 0 : index
    %c0_0 = arith.constant 0 : index
    %0 = vector.load %arg1[%c0, %c0_0] : memref<8x512xf32, #tpu.memory_space<vmem>>, vector<8x512xf32>
    %1 = arith.truncf %0 : vector<8x512xf32> to vector<8x512xbf16>
    %c0_1 = arith.constant 0 : index
    %c0_2 = arith.constant 0 : index
    %2 = vector.load %arg2[%c0_1, %c0_2] : memref<512x256xbf16, #tpu.memory_space<vmem>>, vector<512x256xbf16>
    %cst = arith.constant dense<0.000000e+00> : vector<8x256xf32>
    %3 = tpu.matmul %1, %2, %cst {dimension_numbers = #tpu.dot_dimension_numbers<[1], [0], [0], [1], [0, 0, 1, 1], [], []>} : vector<8x512xbf16>, vector<512x256xbf16>, vector<8x256xf32> -> vector<8x256xf32>
    %c0_3 = arith.constant 0 : index
    %c0_4 = arith.constant 0 : index
    %4 = vector.load %arg3[%c0_3, %c0_4] : memref<1x256xf32, #tpu.memory_space<vmem>>, vector<1x256xf32>
    %5 = vector.broadcast %4 : vector<1x256xf32> to vector<8x256xf32>
    %6 = arith.addf %3, %5 : vector<8x256xf32>
    %cst_5 = arith.constant 5.000000e-01 : f32
    %7 = vector.broadcast %cst_5 : f32 to vector<8x256xf32>
    %8 = arith.mulf %7, %6 : vector<8x256xf32>
    %cst_6 = arith.constant 0.707106769 : f32
    %9 = vector.broadcast %cst_6 : f32 to vector<8x256xf32>
    %10 = arith.mulf %6, %9 : vector<8x256xf32>
    %11 = math.erf %10 : vector<8x256xf32>
    %cst_7 = arith.constant 1.000000e+00 : f32
    %12 = vector.broadcast %cst_7 : f32 to vector<8x256xf32>
    %13 = arith.addf %12, %11 : vector<8x256xf32>
    %14 = arith.mulf %8, %13 : vector<8x256xf32>
    %15 = arith.truncf %14 : vector<8x256xf32> to vector<8x256xbf16>
    %c0_8 = arith.constant 0 : index
    %c0_9 = arith.constant 0 : index
    %16 = vector.load %arg4[%c0_8, %c0_9] : memref<256x128xbf16, #tpu.memory_space<vmem>>, vector<256x128xbf16>
    %cst_10 = arith.constant dense<0.000000e+00> : vector<8x128xf32>
    %17 = tpu.matmul %15, %16, %cst_10 {dimension_numbers = #tpu.dot_dimension_numbers<[1], [0], [0], [1], [0, 0, 1, 1], [], []>} : vector<8x256xbf16>, vector<256x128xbf16>, vector<8x128xf32> -> vector<8x128xf32>
    %c0_11 = arith.constant 0 : index
    %c0_12 = arith.constant 0 : index
    %18 = vector.load %arg5[%c0_11, %c0_12] : memref<1x128xf32, #tpu.memory_space<vmem>>, vector<1x128xf32>
    %19 = vector.broadcast %18 : vector<1x128xf32> to vector<8x128xf32>
    %20 = arith.addf %17, %19 : vector<8x128xf32>
    %cst_13 = arith.constant 5.000000e-01 : f32
    %21 = vector.broadcast %cst_13 : f32 to vector<8x128xf32>
    %22 = arith.mulf %21, %20 : vector<8x128xf32>
    %cst_14 = arith.constant 0.707106769 : f32
    %23 = vector.broadcast %cst_14 : f32 to vector<8x128xf32>
    %24 = arith.mulf %20, %23 : vector<8x128xf32>
    %25 = math.erf %24 : vector<8x128xf32>
    %cst_15 = arith.constant 1.000000e+00 : f32
    %26 = vector.broadcast %cst_15 : f32 to vector<8x128xf32>
    %27 = arith.addf %26, %25 : vector<8x128xf32>
    %28 = arith.mulf %22, %27 : vector<8x128xf32>
    %29 = arith.truncf %28 : vector<8x128xf32> to vector<8x128xbf16>
    %c0_16 = arith.constant 0 : index
    %c0_17 = arith.constant 0 : index
    %30 = vector.load %arg6[%c0_16, %c0_17] : memref<128x128xbf16, #tpu.memory_space<vmem>>, vector<128x128xbf16>
    %cst_18 = arith.constant dense<0.000000e+00> : vector<8x128xf32>
    %31 = tpu.matmul %29, %30, %cst_18 {dimension_numbers = #tpu.dot_dimension_numbers<[1], [0], [0], [1], [0, 0, 1, 1], [], []>} : vector<8x128xbf16>, vector<128x128xbf16>, vector<8x128xf32> -> vector<8x128xf32>
    %c0_19 = arith.constant 0 : index
    %c0_20 = arith.constant 0 : index
    %32 = vector.load %arg7[%c0_19, %c0_20] : memref<1x128xf32, #tpu.memory_space<vmem>>, vector<1x128xf32>
    %33 = vector.broadcast %32 : vector<1x128xf32> to vector<8x128xf32>
    %34 = arith.addf %31, %33 : vector<8x128xf32>
    %c0_21 = arith.constant 0 : index
    %c0_22 = arith.constant 0 : index
    %35 = vector.load %arg8[%c0_21, %c0_22] : memref<8x128xf32, #tpu.memory_space<vmem>>, vector<8x128xf32>
    tpu.vector_store %arg8[%c0_21, %c0_22], %34 {strides = array<i32>} : memref<8x128xf32, #tpu.memory_space<vmem>>, vector<8x128xf32>,
    return
  }
  func.func @transform_0(%arg0: i32) -> (i32, i32) {
    %c0_i32 = arith.constant 0 : i32
    %c0_i32_0 = arith.constant 0 : i32
    return %arg0, %c0_i32 : i32, i32
  }
  func.func @transform_1(%arg0: i32) -> (i32, i32) {
    %c0_i32 = arith.constant 0 : i32
    %c0_i32_0 = arith.constant 0 : i32
    %c0_i32_1 = arith.constant 0 : i32
    return %c0_i32, %c0_i32_0 : i32, i32
  }
  func.func @transform_2(%arg0: i32) -> (i32, i32) {
    %c0_i32 = arith.constant 0 : i32
    %c0_i32_0 = arith.constant 0 : i32
    %c0_i32_1 = arith.constant 0 : i32
    return %c0_i32, %c0_i32_0 : i32, i32
  }
  func.func @transform_3(%arg0: i32) -> (i32, i32) {
    %c0_i32 = arith.constant 0 : i32
    %c0_i32_0 = arith.constant 0 : i32
    %c0_i32_1 = arith.constant 0 : i32
    return %c0_i32, %c0_i32_0 : i32, i32
  }
  func.func @transform_4(%arg0: i32) -> (i32, i32) {
    %c0_i32 = arith.constant 0 : i32
    %c0_i32_0 = arith.constant 0 : i32
    %c0_i32_1 = arith.constant 0 : i32
    return %c0_i32, %c0_i32_0 : i32, i32
  }
  func.func @transform_5(%arg0: i32) -> (i32, i32) {
    %c0_i32 = arith.constant 0 : i32
    %c0_i32_0 = arith.constant 0 : i32
    %c0_i32_1 = arith.constant 0 : i32
    return %c0_i32, %c0_i32_0 : i32, i32
  }
  func.func @transform_6(%arg0: i32) -> (i32, i32) {
    %c0_i32 = arith.constant 0 : i32
    %c0_i32_0 = arith.constant 0 : i32
    %c0_i32_1 = arith.constant 0 : i32
    return %c0_i32, %c0_i32_0 : i32, i32
  }
  func.func @transform_7(%arg0: i32) -> (i32, i32) {
    %c0_i32 = arith.constant 0 : i32
    %c0_i32_0 = arith.constant 0 : i32
    return %arg0, %c0_i32 : i32, i32
  }
}

</mosaic_0001>

<bundles_post_ra>
// kernel: encoder_forward.1
= control target key start
LH: loop header
LB: loop body
LE: loop exit
PB: predicated region body
PF: predicated region fallthrough
CT: control target
= control target key end

     0   :  { %12 = vsyncpa [#allocation3], 0  ;;  %s1301_s0 = inlined_call_operand.vmem [shape: f32[8,512], index: 0, kind: input, shape index: {}]   ;;  %s1302_s1 = inlined_call_operand.hbm [shape: bf16[512,256], index: 1, kind: input, shape index: {}]   ;;  %s1303_s2 = inlined_call_operand.vmem [shape: f32[1,256], index: 2, kind: input, shape index: {}]   ;;  %s1304_s3 = inlined_call_operand.hbm [shape: bf16[256,128], index: 3, kind: input, shape index: {}]   ;;  %s1305_s4 = inlined_call_operand.vmem [shape: f32[1,128], index: 4, kind: input, shape index: {}]   ;;  %s1306_s5 = inlined_call_operand.vmem [shape: bf16[128,128], index: 5, kind: input, shape index: {}]   ;;  %s1307_s6 = inlined_call_operand.vmem [shape: f32[1,128], index: 6, kind: input, shape index: {}]   ;;  %s1308_s7 = inlined_call_operand.vmem [shape: f32[8,128], index: 7, kind: output, shape index: {}]  }
   0x1   :  { %13 = vsyncpa [#allocation5], 0  ;;  %s1181_s24 = smov [#allocation2]   ;;  %s1133_s28 = scalar_lea.hbm %s1302_s1, 8192 }
   0x2   :  { %s21_s25 = sshll.u32 %s1181_s24, 4  ;;  %p1134_p0 = scmp.ne.s32.totalorder %s1302_s1, %s1133_s28  ;;  %s22_s25 = int_to_ptr.vmem [resolvable:$true] %s21_s25 }
   0x3   :  { %p1137_p1 = scmp.lt.u32.totalorder %s1133_s28, %s1302_s1 }
   0x5   :  { %p1139_p2 = pnand %p1137_p1, %p1134_p0 }
   0x7   :  { %1142 = shalt.err (!%p1139_p2)
}
   0x8   :  { %s1143_s10 = scalar_lea.vmem %s22_s25, 8192  ;;  %p1148_p4 = scmp.lt.s32.totalorder %s22_s25, %s22_s25 }
   0x9   :  { %p1144_p3 = scmp.ne.s32.totalorder %s22_s25, %s1143_s10  ;;  %p1149_p5 = scmp.lt.s32.totalorder %s1143_s10, %s1143_s10 }
   0xb   :  { %p1150_p6 = por %p1149_p5, %p1148_p4 }
   0xd   :  { %p1151_p7 = pnand %p1150_p6, %p1144_p3 }
   0xf   :  { %1154 = shalt.err (!%p1151_p7)
}
  0x10   :  { %s1182_s11 = smov 128   ;;  %s1183_s12 = smov 8  }
  0x11   :  { %27 = dma.hbm_to_vmem [thread:$0]  %s1302_s1, 8192, %s22_s25, [#allocation3], %s1182_s11, %s1182_s11, %s1183_s12  }
  0x12   :  { %s1184_s15 = smov [#allocation4]   ;;  %s1155_s19 = scalar_lea.hbm %s1304_s3, 2048 }
  0x13   :  { %s35_s16 = sshll.u32 %s1184_s15, 4  ;;  %p1156_p8 = scmp.ne.s32.totalorder %s1304_s3, %s1155_s19  ;;  %s36_s16 = int_to_ptr.vmem [resolvable:$true] %s35_s16 }
  0x14   :  { %p1159_p9 = scmp.lt.u32.totalorder %s1155_s19, %s1304_s3 }
  0x16   :  { %p1161_p10 = pnand %p1159_p9, %p1156_p8 }
  0x18   :  { %1164 = shalt.err (!%p1161_p10)
}
  0x19   :  { %s1165_s24 = scalar_lea.vmem %s36_s16, 2048  ;;  %p1170_p12 = scmp.lt.s32.totalorder %s36_s16, %s36_s16 }
  0x1a   :  { %p1166_p11 = scmp.ne.s32.totalorder %s36_s16, %s1165_s24  ;;  %p1171_p13 = scmp.lt.s32.totalorder %s1165_s24, %s1165_s24 }
  0x1c   :  { %p1172_p0 = por %p1171_p13, %p1170_p12 }
  0x1e   :  { %p1173_p1 = pnand %p1172_p0, %p1166_p11 }
  0x20   :  { %1176 = shalt.err (!%p1173_p1)
}
  0x21   :  { %s1185_s1 = smov 64   ;;  %s1186_s25 = smov 4  }
  0x22   :  { %41 = dma.hbm_to_vmem [thread:$0]  %s1304_s3, 2048, %s36_s16, [#allocation5], %s1185_s1, %s1185_s1, %s1186_s25  }
  0x23   :  { %1177 = dma.done.wait [#allocation3], 8192  }
  0x24   :  { %1178 = vsyncadd [#allocation3], 4294959104 }
  0x25   :  { %1179 = dma.done.wait [#allocation5], 2048  }
  0x26   :  { %1180 = vsyncadd [#allocation5], 4294965248  ;;  %v1007_v0 = vld [vmem:[#allocation2 + $0x4] ss:$8 sps:$4 sm:$0xff]   ;;  %v1009_v1 = vld [vmem:[#allocation2] ss:$8 sps:$4 sm:$0xff]  }
  0x27   :  { %459 = vmatprep.subr.bf16.mxu0 %v1007_v0  ;;  %v1010_v2 = vld [vmem:[#allocation2 + $0x14] ss:$8 sps:$4 sm:$0xff]   ;;  %v1012_v3 = vld [vmem:[#allocation2 + $0x10] ss:$8 sps:$4 sm:$0xff]   ;;  %v1013_v4 = vld [vmem:[#allocation2 + $0x24] ss:$8 sps:$4 sm:$0xff]  }
  0x28   :  { %460 = vmatpush1.bf16.msra.mxu0 %v1009_v1  ;;  %v1015_v5 = vld [vmem:[#allocation2 + $0x20] ss:$8 sps:$4 sm:$0xff]   ;;  %v1016_v6 = vld [vmem:[#allocation2 + $0x34] ss:$8 sps:$4 sm:$0xff]   ;;  %v1018_v7 = vld [vmem:[#allocation2 + $0x30] ss:$8 sps:$4 sm:$0xff]  }
  0x29   :  { %461 = vmatprep.subr.bf16.mxu0 %v1010_v2  ;;  %v1019_v8 = vld [vmem:[#allocation2 + $0x44] ss:$8 sps:$4 sm:$0xff]   ;;  %v1021_v9 = vld [vmem:[#allocation2 + $0x40] ss:$8 sps:$4 sm:$0xff]   ;;  %v1022_v10 = vld [vmem:[#allocation2 + $0x54] ss:$8 sps:$4 sm:$0xff]  }
  0x2a   :  { %v1024_v11 = vld [vmem:[#allocation2 + $0x50] ss:$8 sps:$4 sm:$0xff]   ;;  %v1025_v12 = vld [vmem:[#allocation2 + $0x64] ss:$8 sps:$4 sm:$0xff]   ;;  %v1027_v15 = vld [vmem:[#allocation2 + $0x60] ss:$8 sps:$4 sm:$0xff]  }
  0x2b   :  { %v56_v13 = vld [vmem:[%s1301_s0 + $0x8] sm:$0xff]  ;;  %v1028_v16 = vld [vmem:[#allocation2 + $0x74] ss:$8 sps:$4 sm:$0xff]   ;;  %v1030_v17 = vld [vmem:[#allocation2 + $0x70] ss:$8 sps:$4 sm:$0xff]   ;;  %vm1188_vm0 = vmmov 0  }
  0x2c   :  { %462 = vmatpush1.bf16.msra.mxu0 %v1012_v3  ;;  %v60_v14 = vpack.c.bf16 %v56_v13, %v56_v13  ;;  %v1031_v18 = vld [vmem:[#allocation2 + $0x84] ss:$8 sps:$4 sm:$0xff]   ;;  %v1033_v19 = vld [vmem:[#allocation2 + $0x80] ss:$8 sps:$4 sm:$0xff]   ;;  %v1034_v20 = vld [vmem:[#allocation2 + $0x94] ss:$8 sps:$4 sm:$0xff]  }
  0x2d   :  { %463 = vmatprep.subr.bf16.mxu0 %v1013_v4  ;;  %v1036_v21 = vld [vmem:[#allocation2 + $0x90] ss:$8 sps:$4 sm:$0xff]   ;;  %v1037_v22 = vld [vmem:[#allocation2 + $0xa4] ss:$8 sps:$4 sm:$0xff]   ;;  %v1039_v23 = vld [vmem:[#allocation2 + $0xa0] ss:$8 sps:$4 sm:$0xff]  }
  0x2e   :  { %491 = vmatprep.mubr.bf16.mxu0 %v60_v14  ;;  %v1040_v24 = vld [vmem:[#allocation2 + $0xb4] ss:$8 sps:$4 sm:$0xff]   ;;  %v1042_v25 = vld [vmem:[#allocation2 + $0xb0] ss:$8 sps:$4 sm:$0xff]   ;;  %v1043_v26 = vld [vmem:[#allocation2 + $0xc4] ss:$8 sps:$4 sm:$0xff]  }
  0x2f   :  { %v1103_v27 = vld [vmem:[#allocation4 + $0x40] sm:$0xff]   ;;  %v1105_v30 = vld [vmem:[#allocation4 + $0x48] sm:$0xff]   ;;  %v1046_v32 = vld [vmem:[#allocation2 + $0xd4] ss:$8 sps:$4 sm:$0xff]  }
  0x30   :  { %464 = vmatpush1.bf16.msra.mxu0 %v1015_v5  ;;  %v1045_v28 = vld [vmem:[#allocation2 + $0xc0] ss:$8 sps:$4 sm:$0xff]   ;;  %942 = vmatprep.subr.bf16.mxu1 %v1103_v27  ;;  %v1048_v33 = vld [vmem:[#allocation2 + $0xd0] ss:$8 sps:$4 sm:$0xff]   ;;  %v1049_v34 = vld [vmem:[#allocation2 + $0xe4] ss:$8 sps:$4 sm:$0xff]  }
  0x31   :  { %465 = vmatprep.subr.bf16.mxu0 %v1016_v6  ;;  %v1104_v29 = vld [vmem:[#allocation4] sm:$0xff]   ;;  %v1106_v31 = vld [vmem:[#allocation4 + $0x8] sm:$0xff]   ;;  %v1052_v36 = vld [vmem:[#allocation2 + $0xf4] ss:$8 sps:$4 sm:$0xff]  }
  0x32   :  { %943 = vmatpush3.bf16.msra.mxu1 %v1104_v29  ;;  %v1051_v35 = vld [vmem:[#allocation2 + $0xe0] ss:$8 sps:$4 sm:$0xff]   ;;  %v1054_v37 = vld [vmem:[#allocation2 + $0xf0] ss:$8 sps:$4 sm:$0xff]   ;;  %v1057_v39 = vld [vmem:[#allocation2 + $0x104] ss:$8 sps:$4 sm:$0xff]  }
  0x33   :  { %944 = vmatprep.subr.bf16.mxu1 %v1105_v30  ;;  %v55_v38 = vld [vmem:[%s1301_s0] sm:$0xff]  ;;  %v58_v40 = vld [vmem:[%s1301_s0 + $0x18] sm:$0xff]  ;;  %v1108_v13 = vld [vmem:[#allocation4 + $0x10] sm:$0xff]  }
  0x34   :  { %466 = vmatpush1.bf16.msra.mxu0 %v1018_v7  ;;  %v59_v41 = vpack.c.bf16 %v55_v38, %v55_v38  ;;  %v1055_v42 = vld [vmem:[#allocation2 + $0x100] ss:$8 sps:$4 sm:$0xff]   ;;  %v62_v43 = vpack.c.bf16 %v58_v40, %v58_v40  ;;  %v1060_v44 = vld [vmem:[#allocation2 + $0x114] ss:$8 sps:$4 sm:$0xff]   ;;  %v1058_v45 = vld [vmem:[#allocation2 + $0x110] ss:$8 sps:$4 sm:$0xff]  }
  0x35   :  { %467 = vmatprep.subr.bf16.mxu0 %v1019_v8  ;;  %v1063_v46 = vld [vmem:[#allocation2 + $0x124] ss:$8 sps:$4 sm:$0xff]   ;;  %v1061_v47 = vld [vmem:[#allocation2 + $0x120] ss:$8 sps:$4 sm:$0xff]   ;;  %v1066_v48 = vld [vmem:[#allocation2 + $0x134] ss:$8 sps:$4 sm:$0xff]  }
  0x36   :  { %945 = vmatpush3.bf16.msra.mxu1 %v1106_v31  ;;  %v1064_v49 = vld [vmem:[#allocation2 + $0x130] ss:$8 sps:$4 sm:$0xff]   ;;  %v1069_v50 = vld [vmem:[#allocation2 + $0x144] ss:$8 sps:$4 sm:$0xff]   ;;  %v1067_v51 = vld [vmem:[#allocation2 + $0x140] ss:$8 sps:$4 sm:$0xff]  }
  0x37   :  { %v1072_v52 = vld [vmem:[#allocation2 + $0x154] ss:$8 sps:$4 sm:$0xff]   ;;  %v1070_v53 = vld [vmem:[#allocation2 + $0x150] ss:$8 sps:$4 sm:$0xff]   ;;  %v1075_v54 = vld [vmem:[#allocation2 + $0x164] ss:$8 sps:$4 sm:$0xff]  }
  0x38   :  { %468 = vmatpush1.bf16.msra.mxu0 %v1021_v9  ;;  %v1073_v55 = vld [vmem:[#allocation2 + $0x160] ss:$8 sps:$4 sm:$0xff]   ;;  %v1078_v56 = vld [vmem:[#allocation2 + $0x174] ss:$8 sps:$4 sm:$0xff]   ;;  %v1076_v57 = vld [vmem:[#allocation2 + $0x170] ss:$8 sps:$4 sm:$0xff]  }
  0x39   :  { %469 = vmatprep.subr.bf16.mxu0 %v1022_v10  ;;  %v1081_v58 = vld [vmem:[#allocation2 + $0x184] ss:$8 sps:$4 sm:$0xff]   ;;  %v1079_v59 = vld [vmem:[#allocation2 + $0x180] ss:$8 sps:$4 sm:$0xff]   ;;  %v1084_v60 = vld [vmem:[#allocation2 + $0x194] ss:$8 sps:$4 sm:$0xff]  }
  0x3a   :  { %v1082_v61 = vld [vmem:[#allocation2 + $0x190] ss:$8 sps:$4 sm:$0xff]   ;;  %v1087_v62 = vld [vmem:[#allocation2 + $0x1a4] ss:$8 sps:$4 sm:$0xff]   ;;  %v1085_v63 = vld [vmem:[#allocation2 + $0x1a0] ss:$8 sps:$4 sm:$0xff]  }
  0x3b   :  { %v1090_v0 = vld [vmem:[#allocation2 + $0x1b4] ss:$8 sps:$4 sm:$0xff]   ;;  %v1088_v1 = vld [vmem:[#allocation2 + $0x1b0] ss:$8 sps:$4 sm:$0xff]   ;;  %v1093_v2 = vld [vmem:[#allocation2 + $0x1c4] ss:$8 sps:$4 sm:$0xff]  }
  0x3c   :  { %470 = vmatpush1.bf16.msra.mxu0 %v1024_v11  ;;  %v1091_v3 = vld [vmem:[#allocation2 + $0x1c0] ss:$8 sps:$4 sm:$0xff]   ;;  %v1096_v4 = vld [vmem:[#allocation2 + $0x1d4] ss:$8 sps:$4 sm:$0xff]   ;;  %v1094_v5 = vld [vmem:[#allocation2 + $0x1d0] ss:$8 sps:$4 sm:$0xff]  }
  0x3d   :  { %471 = vmatprep.subr.bf16.mxu0 %v1025_v12  ;;  %v1099_v6 = vld [vmem:[#allocation2 + $0x1e4] ss:$8 sps:$4 sm:$0xff]   ;;  %v1097_v7 = vld [vmem:[#allocation2 + $0x1e0] ss:$8 sps:$4 sm:$0xff]   ;;  %v1102_v8 = vld [vmem:[#allocation2 + $0x1f4] ss:$8 sps:$4 sm:$0xff]  }
  0x3e   :  { %v1100_v9 = vld [vmem:[#allocation2 + $0x1f0] ss:$8 sps:$4 sm:$0xff]  }
  0x3f   :  { %v57_v10 = vld [vmem:[%s1301_s0 + $0x10] sm:$0xff]  ;;  %v1109_v14 = vld [vmem:[#allocation4 + $0x58] sm:$0xff]  }
  0x40   :  { %472 = vmatpush1.bf16.msra.mxu0 %v1027_v15  ;;  %v61_v11 = vpack.c.bf16 %v57_v10, %v57_v10  ;;  %v1107_v12 = vld [vmem:[#allocation4 + $0x50] sm:$0xff]   ;;  %v1110_v15 = vld [vmem:[#allocation4 + $0x18] sm:$0xff]  }
  0x41   :  { %473 = vmatprep.subr.bf16.mxu0 %v1028_v16  ;;  %946 = vmatprep.subr.bf16.mxu1 %v1107_v12  ;;  %v1111_v16 = vld [vmem:[#allocation4 + $0x60] sm:$0xff]  }
  0x42   :  { %947 = vmatpush3.bf16.msra.mxu1 %v1108_v13 }
  0x43   :  { %948 = vmatprep.subr.bf16.mxu1 %v1109_v14 }
  0x44   :  { %474 = vmatpush1.bf16.msra.mxu0 %v1030_v17  ;;  %v1112_v17 = vld [vmem:[#allocation4 + $0x20] sm:$0xff]  }
  0x45   :  { %475 = vmatprep.subr.bf16.mxu0 %v1031_v18  ;;  %v1113_v18 = vld [vmem:[#allocation4 + $0x68] sm:$0xff]  }
  0x46   :  { %949 = vmatpush3.bf16.msra.mxu1 %v1110_v15 }
  0x47   :  { %950 = vmatprep.subr.bf16.mxu1 %v1111_v16 }
  0x48   :  { %476 = vmatpush1.bf16.msra.mxu0 %v1033_v19  ;;  %v1114_v19 = vld [vmem:[#allocation4 + $0x28] sm:$0xff]  }
  0x49   :  { %477 = vmatprep.subr.bf16.mxu0 %v1034_v20  ;;  %v1115_v20 = vld [vmem:[#allocation4 + $0x70] sm:$0xff]  }
  0x4a   :  { %951 = vmatpush3.bf16.msra.mxu1 %v1112_v17 }
  0x4b   :  { %952 = vmatprep.subr.bf16.mxu1 %v1113_v18 }
  0x4c   :  { %478 = vmatpush1.bf16.msra.mxu0 %v1036_v21  ;;  %v1116_v21 = vld [vmem:[#allocation4 + $0x30] sm:$0xff]  }
  0x4d   :  { %479 = vmatprep.subr.bf16.mxu0 %v1037_v22  ;;  %v1117_v22 = vld [vmem:[#allocation4 + $0x78] sm:$0xff]  }
  0x4e   :  { %953 = vmatpush3.bf16.msra.mxu1 %v1114_v19 }
  0x4f   :  { %954 = vmatprep.subr.bf16.mxu1 %v1115_v20 }
  0x50   :  { %480 = vmatpush1.bf16.msra.mxu0 %v1039_v23  ;;  %v1118_v23 = vld [vmem:[#allocation4 + $0x38] sm:$0xff]  }
  0x51   :  { %481 = vmatprep.subr.bf16.mxu0 %v1040_v24  ;;  %v1187_v24 = vmov 0.0  }
  0x52   :  { %955 = vmatpush3.bf16.msra.mxu1 %v1116_v21 }
  0x53   :  { %956 = vmatprep.subr.bf16.mxu1 %v1117_v22 }
  0x54   :  { %482 = vmatpush1.bf16.msra.mxu0 %v1042_v25  ;;  %v129_v25 = vlaneseq }
  0x55   :  { %483 = vmatprep.subr.bf16.mxu0 %v1043_v26 }
  0x56   :  { %957 = vmatpush3.bf16.msra.mxu1 %v1118_v23  ;;  %v130_v26 = vshrl.u32 %v129_v25, 7 }
  0x57   :  { %973 = vmatprep.subr.bf16.mxu1 %v1187_v24 }
  0x58   :  { %484 = vmatpush1.bf16.msra.mxu0 %v1045_v28  ;;  %v131_v27 = vsub.s32 0, %v130_v26  ;;  %v127_v28 = vld [vmem:[%s1303_s2] sm:$0x3]  ;;  %v135_v29 = vsub.s32 1, %v130_v26 }
  0x59   :  { %485 = vmatprep.subr.bf16.mxu0 %v1046_v32 }
  0x5a   :  { %v132_v30 = vrot.slane %v127_v28, %v131_v27  ;;  %v136_v31 = vrot.slane %v127_v28, %v135_v29 }
  0x5c   :  { %486 = vmatpush1.bf16.msra.mxu0 %v1048_v33 }
  0x5d   :  { %487 = vmatprep.subr.bf16.mxu0 %v1049_v34 }
  0x60   :  { %488 = vmatpush1.bf16.msra.mxu0 %v1051_v35 }
  0x61   :  { %489 = vmatprep.subr.bf16.mxu0 %v1052_v36 }
  0x64   :  { %490 = vmatpush1.bf16.msra.mxu0 %v1054_v37 }
  0x65   :  { %500 = vmatprep.subr.bf16.mxu0 %v1057_v39 }
  0x67   :  { %492 = vmatmul.mubr.bf16.vlgmr.msra.gmra.mrb[0].mxu0 %v59_v41 }
  0x68   :  { %501 = vmatpush1.bf16.msra.mxu0 %v1055_v42  ;;  %532 = vmatprep.mubr.bf16.mxu0 %v62_v43 }
  0x69   :  { %502 = vmatprep.subr.bf16.mxu0 %v1060_v44 }
  0x6c   :  { %503 = vmatpush1.bf16.msra.mxu0 %v1058_v45 }
  0x6d   :  { %504 = vmatprep.subr.bf16.mxu0 %v1063_v46 }
  0x70   :  { %505 = vmatpush1.bf16.msra.mxu0 %v1061_v47 }
  0x71   :  { %506 = vmatprep.subr.bf16.mxu0 %v1066_v48 }
  0x74   :  { %507 = vmatpush1.bf16.msra.mxu0 %v1064_v49  ;;  %v1119_v49 = vld [vmem:[%s1306_s5] sm:$0xff]  }
  0x75   :  { %508 = vmatprep.subr.bf16.mxu0 %v1069_v50 }
  0x78   :  { %509 = vmatpush1.bf16.msra.mxu0 %v1067_v51  ;;  %v1120_v51 = vld [vmem:[%s1306_s5 + $0x8] sm:$0xff]  }
  0x79   :  { %510 = vmatprep.subr.bf16.mxu0 %v1072_v52  ;;  %v1121_v52 = vld [vmem:[%s1306_s5 + $0x10] sm:$0xff]  }
  0x7c   :  { %511 = vmatpush1.bf16.msra.mxu0 %v1070_v53  ;;  %v1122_v53 = vld [vmem:[%s1306_s5 + $0x18] sm:$0xff]  }
  0x7d   :  { %512 = vmatprep.subr.bf16.mxu0 %v1075_v54  ;;  %v1123_v54 = vld [vmem:[%s1306_s5 + $0x20] sm:$0xff]  }
  0x80   :  { %513 = vmatpush1.bf16.msra.mxu0 %v1073_v55  ;;  %v1124_v55 = vld [vmem:[%s1306_s5 + $0x28] sm:$0xff]  }
  0x81   :  { %514 = vmatprep.subr.bf16.mxu0 %v1078_v56  ;;  %v1125_v56 = vld [vmem:[%s1306_s5 + $0x30] sm:$0xff]  }
  0x84   :  { %515 = vmatpush1.bf16.msra.mxu0 %v1076_v57  ;;  %v1126_v57 = vld [vmem:[%s1306_s5 + $0x38] sm:$0xff]  }
  0x85   :  { %516 = vmatprep.subr.bf16.mxu0 %v1081_v58 }
  0x88   :  { %517 = vmatpush1.bf16.msra.mxu0 %v1079_v59  ;;  %v916_v59 = vld [vmem:[%s1305_s4] ss:$0 sm:$0xff] }
  0x89   :  { %518 = vmatprep.subr.bf16.mxu0 %v1084_v60 }
  0x8c   :  { %519 = vmatpush1.bf16.msra.mxu0 %v1082_v61 }
  0x8d   :  { %520 = vmatprep.subr.bf16.mxu0 %v1087_v62 }
  0x90   :  { %521 = vmatpush1.bf16.msra.mxu0 %v1085_v63 }
  0x91   :  { %522 = vmatprep.subr.bf16.mxu0 %v1090_v0 }
  0x94   :  { %523 = vmatpush1.bf16.msra.mxu0 %v1088_v1 }
  0x95   :  { %524 = vmatprep.subr.bf16.mxu0 %v1093_v2 }
  0x98   :  { %525 = vmatpush1.bf16.msra.mxu0 %v1091_v3 }
  0x99   :  { %526 = vmatprep.subr.bf16.mxu0 %v1096_v4 }
  0x9c   :  { %527 = vmatpush1.bf16.msra.mxu0 %v1094_v5 }
  0x9d   :  { %528 = vmatprep.subr.bf16.mxu0 %v1099_v6 }
  0xa0   :  { %529 = vmatpush1.bf16.msra.mxu0 %v1097_v7  ;;  %v933_v7 = vld [vmem:[%s1307_s6] ss:$0 sm:$0xff] }
  0xa1   :  { %530 = vmatprep.subr.bf16.mxu0 %v1102_v8 }
  0xa4   :  { %531 = vmatpush1.bf16.msra.mxu0 %v1100_v9 }
  0xa7   :  { %533 = vmatmul.mubr.bf16.vlgmr.msra.gmra.mrb[0].mxu0 %v61_v11 }
 0x17a   :  { %v534_v32 = vpop.f32.mrb[0].mxu0 }
 0x17b   :  { %v993_v33 = vadd.f32 %v534_v32, %v132_v30  ;;  %v536_v34 = vpop.f32.mrb[1].mxu0 }
 0x17c   :  { %v994_v35 = vadd.f32 %v536_v34, %v136_v31  ;;  %v538_v36 = vpop.f32.mrb[2].mxu0 }
 0x17d   :  { %v543_v37 = vmul.f32 0.70710677, %v993_v33  ;;  %v539_v38 = vpop.f32.mrb[3].mxu0  ;;  %v541_v42 = vmul.f32 0.5, %v993_v33 }
 0x17e   :  { %v544_v39 = vmul.f32 0.70710677, %v994_v35  ;;  %v542_v44 = vmul.f32 0.5, %v994_v35 }
 0x17f   :  { %1127 = verf.f32 %v543_v37 }
 0x180   :  { %1129 = verf.f32 %v544_v39 }
 0x189   :  { %v1128_v40 = vpop.eup %1127 }
 0x18a   :  { %v1130_v41 = vpop.eup %1129  ;;  %v547_v43 = vadd.f32 1.0, %v1128_v40 }
 0x18b   :  { %v548_v45 = vadd.f32 1.0, %v1130_v41 }
 0x18c   :  { %v549_v46 = vmul.f32 %v547_v43, %v541_v42 }
 0x18d   :  { %v550_v47 = vmul.f32 %v548_v45, %v542_v44 }
 0x18e   :  { %v551_v50 = vpack.c.bf16 %v549_v46, %v549_v46 }
 0x18f   :  { %v552_v48 = vpack.c.bf16 %v550_v47, %v550_v47 }
 0x191   :  { %720 = vmatprep.mubr.bf16.mxu1 %v552_v48 }
 0x192   :  { %721 = vmatmul.mubr.bf16.vlgmr.msra.gmra.mrb[0].mxu1 %v551_v50 }
 0x193   :  { %974 = vmatpush3.bf16.msra.mxu1 %v1119_v49  ;;  %989 = vmatprep.mubr.msk.bf16.mxu1 %vm1188_vm0, %v1187_v24 }
 0x194   :  { %975 = vmatprep.subr.bf16.mxu1 %v1187_v24 }
 0x197   :  { %976 = vmatpush3.bf16.msra.mxu1 %v1120_v51 }
 0x198   :  { %977 = vmatprep.subr.bf16.mxu1 %v1187_v24 }
 0x19b   :  { %978 = vmatpush3.bf16.msra.mxu1 %v1121_v52 }
 0x19c   :  { %979 = vmatprep.subr.bf16.mxu1 %v1187_v24 }
 0x19f   :  { %980 = vmatpush3.bf16.msra.mxu1 %v1122_v53 }
 0x1a0   :  { %981 = vmatprep.subr.bf16.mxu1 %v1187_v24 }
 0x1a3   :  { %982 = vmatpush3.bf16.msra.mxu1 %v1123_v54 }
 0x1a4   :  { %983 = vmatprep.subr.bf16.mxu1 %v1187_v24 }
 0x1a7   :  { %984 = vmatpush3.bf16.msra.mxu1 %v1124_v55 }
 0x1a8   :  { %985 = vmatprep.subr.bf16.mxu1 %v1187_v24 }
 0x1ab   :  { %986 = vmatpush3.bf16.msra.mxu1 %v1125_v56 }
 0x1ac   :  { %987 = vmatprep.subr.bf16.mxu1 %v1187_v24 }
 0x1af   :  { %988 = vmatpush3.bf16.msra.mxu1 %v1126_v57 }
 0x265   :  { %v958_v58 = vpop.f32.mrb[0].mxu1 }
 0x266   :  { %v959_v60 = vpop.f32.mrb[1].mxu1 }
 0x267   :  { %v960_v61 = vadd.f32 %v959_v60, %v958_v58  ;;  %v961_v62 = vpop.f32.mrb[2].mxu1 }
 0x268   :  { %v962_v63 = vpop.f32.mrb[3].mxu1 }
 0x269   :  { %v723_v0 = vadd.f32 %v960_v61, %v916_v59 }
 0x26b   :  { %v729_v1 = vmul.f32 0.70710677, %v723_v0  ;;  %v728_v3 = vmul.f32 0.5, %v723_v0 }
 0x26d   :  { %1131 = verf.f32 %v729_v1 }
 0x277   :  { %v1132_v2 = vpop.eup %1131 }
 0x278   :  { %v731_v4 = vadd.f32 1.0, %v1132_v2 }
 0x27a   :  { %v732_v5 = vmul.f32 %v731_v4, %v728_v3 }
 0x27c   :  { %v733_v6 = vpack.c.bf16 %v732_v5, %v732_v5 }
 0x27e   :  { %990 = vmatmul.mubr.bf16.vlgmr.msra.gmra.mrb[4].mxu1 %v733_v6 }
 0x351   :  { %v839_v8 = vpop.f32.mrb[4].mxu1 }
 0x352   :  { %v840_v9 = vadd.f32 %v933_v7, %v839_v8  ;;  %v991_v10 = vpop.f32.mrb[5].mxu1 }
 0x353   :  { %v842_v11 = vpop.f32.mrb[6].mxu1 }
 0x354   :  { %845 = vst [vmem:[%s1308_s7] sm:$0xff] %v840_v9  ;;  %v992_v12 = vpop.f32.mrb[7].mxu1 }
 0x355   :  { %850 = vsyncpa [#allocation3], 1 }
 0x356   :  { %851 = vsyncpa [#allocation5], 1 }

</bundles_post_ra>
